<compile_context>
chip_gen: v7x
topology: tpu7x:2x2x1
jax: 0.10.0
libtpu: 0.0.40
codegen_flags: <defaults>
</compile_context>

<pallas_src>
import numpy as np
import jax
import jax.numpy as jnp
from jax.experimental import pallas as pl
from jax.experimental.pallas import tpu as pltpu


def _round_up(x, m):
    return ((x + m - 1) // m) * m


def t_kernel(dt_ref, abst_ref, w_ref, b_ref, tw_ref, o_ref):
    """Gated time encoding, lane-folded.

    dt_ref:   (TM, L)  dt broadcast across the time-feature lanes
    abst_ref: (TM, L)  gathered absolute-time embeddings (row-folded)
    w_ref:    (1, L)   frequency params, lane-tiled
    b_ref:    (1, L)   phase params, lane-tiled
    tw_ref:   (1, L)   sigmoid(t_w), lane-tiled (sigmoid hoisted to wrapper)
    o_ref:    (TM, L)  (1 - tw) * cos(w*dt + b) + tw * abst
    """
    tw = tw_ref[...]
    t = jnp.cos(w_ref[...] * dt_ref[...] + b_ref[...])
    o_ref[...] = (1.0 - tw) * t + tw * abst_ref[...]


def t_kernel_yago(abst_ref, tw_ref, o_ref):
    """YAGO branch: relative-time term is zeroed -> only tw * abst survives."""
    o_ref[...] = tw_ref[...] * abst_ref[...]


def dynamic_embedding_forward(entities, dt, abst, ent_table, abst_table,
                              w, b, t_w, dataset="ICEWS14"):
    """JAX wrapper reproducing DynamicEmbedding.forward for 2-D `entities` (B, S)."""
    B, S = entities.shape
    N = B * S
    dim_t = w.shape[0]
    dim_e = ent_table.shape[1]

    # ---- glue: data-dependent gathers stay in plain JAX --------------------
    # TODO(synk): for large tables, fuse these gathers into the kernel (scalar
    # prefetch indices + manual DMA) so the gathered abst rows never hit HBM.
    e = jnp.take(ent_table, entities.reshape(-1), axis=0).reshape(B, S, dim_e)
    abst_flat = abst.reshape(-1)
    if dataset in ("ICEWS14", "ICEWS18"):
        abst_flat = abst_flat // 24                                # floor div
    abst_embd = jnp.take(abst_table, abst_flat, axis=0).astype(jnp.float32)

    # ---- lane-dense folding: FOLD token rows -> one 128-wide lane row -------
    FOLD = 128 // dim_t if 128 % dim_t == 0 else 1
    L = FOLD * dim_t

    R = pl.cdiv(N, FOLD)                 # folded row count
    TM = 512 if R >= 512 else R          # full-extent block when R is small
    R_pad = _round_up(R, TM)
    N_pad = R_pad * FOLD

    def fold(x_2d):                      # (N, dim_t) -> (R_pad, L)
        x_2d = jnp.pad(x_2d, ((0, N_pad - N), (0, 0)))
        return x_2d.reshape(R_pad, L)

    abst_f = fold(abst_embd)
    tw_sig = jax.nn.sigmoid(t_w.astype(jnp.float32))               # hoisted
    tw_tile = jnp.tile(tw_sig, FOLD).reshape(1, L)

    grid = (R_pad // TM,)
    row_spec = pl.BlockSpec((TM, L), lambda i: (i, 0))
    par_spec = pl.BlockSpec((1, L), lambda i: (0, 0))
    out_shape = jax.ShapeDtypeStruct((R_pad, L), jnp.float32)
    cparams = pltpu.CompilerParams(dimension_semantics=("parallel",))

    if dataset == "YAGO":
        t_folded = pl.pallas_call(
            t_kernel_yago,
            out_shape=out_shape,
            grid_spec=pl.GridSpec(
                grid=grid,
                in_specs=[row_spec, par_spec],
                out_specs=row_spec,
            ),
            compiler_params=cparams,
        )(abst_f, tw_tile)
    else:
        dt_exp = jnp.broadcast_to(dt.reshape(N, 1).astype(jnp.float32),
                                  (N, dim_t))
        dt_f = fold(dt_exp)
        w_tile = jnp.tile(w.astype(jnp.float32), FOLD).reshape(1, L)
        b_tile = jnp.tile(b.astype(jnp.float32), FOLD).reshape(1, L)
        t_folded = pl.pallas_call(
            t_kernel,
            out_shape=out_shape,
            grid_spec=pl.GridSpec(
                grid=grid,
                in_specs=[row_spec, row_spec, par_spec, par_spec, par_spec],
                out_specs=row_spec,
            ),
            compiler_params=cparams,
        )(dt_f, abst_f, w_tile, b_tile, tw_tile)

    t_out = t_folded.reshape(N_pad, dim_t)[:N].reshape(B, S, dim_t)
    # Concat with the (untouched) entity embedding happens outside the kernel.
    return jnp.concatenate([e, t_out], axis=-1)


def reference_forward(entities, dt, abst, ent_table, abst_table, w, b, t_w, dataset):
    """Pure-JAX reference mirroring the PyTorch forward (2-D entities path)."""
    B, S = entities.shape
    dt3 = dt[..., None].astype(jnp.float32)                        # (B, S, 1)
    tw = jax.nn.sigmoid(t_w)[None, None, :]
    t = jnp.cos(w[None, None, :] * dt3 + b[None, None, :])
    if dataset == "YAGO":
        t = jnp.zeros_like(t)
    a = abst.reshape(-1)
    if dataset in ("ICEWS14", "ICEWS18"):
        a = a // 24
    abst_embd = abst_table[a].reshape(B, S, -1)
    t = (1.0 - tw) * t + tw * abst_embd
    e = ent_table[entities]
    return jnp.concatenate([e, t], axis=-1)


if __name__ == "__main__":
    key = jax.random.PRNGKey(0)
    n_ent, dim_ent, dim_t = 100, 48, 16          # dim_e = dim_ent - dim_t = 32
    dim_e = dim_ent - dim_t
    B, S = 2, 8
    n_days = 30                                   # rows in abst_embs table

    k1, k2, k3, k4, k5 = jax.random.split(key, 5)

    # --- deterministic parameter init (mirrors __init__ shapes) -------------
    ent_table = jax.random.normal(k1, (n_ent, dim_e), dtype=jnp.float32)
    abst_table = jax.random.normal(k2, (n_days, dim_t), dtype=jnp.float32)
    w = jnp.asarray((1.0 / 10 ** np.linspace(0, 9, dim_t)).astype(np.float32))
    b = jnp.zeros((dim_t,), dtype=jnp.float32)
    t_w = -jnp.ones((dim_t,), dtype=jnp.float32)

    # --- example inputs ------------------------------------------------------
    entities = jax.random.randint(k3, (B, S), 0, n_ent)
    dt = jax.random.uniform(k4, (B, S), dtype=jnp.float32, minval=0.0, maxval=100.0)
    abst = jax.random.randint(k5, (B, S), 0, n_days * 24)

    # ICEWS14 path (cos time encoding + sigmoid-gated blend)
    out = dynamic_embedding_forward(entities, dt, abst, ent_table, abst_table,
                                    w, b, t_w, "ICEWS14")
    out = jax.block_until_ready(out)
    ref = reference_forward(entities, dt, abst, ent_table, abst_table,
                            w, b, t_w, "ICEWS14")
    assert out.shape == (B, S, dim_ent)
    assert np.allclose(np.asarray(out), np.asarray(ref), rtol=1e-5, atol=1e-5)

    # YAGO path (time encoding zeroed; gate applied to absolute-time only)
    abst_yago = abst // 24                        # keep indices inside the table
    out_y = dynamic_embedding_forward(entities, dt, abst_yago, ent_table,
                                      abst_table, w, b, t_w, "YAGO")
    out_y = jax.block_until_ready(out_y)
    ref_y = reference_forward(entities, dt, abst_yago, ent_table, abst_table,
                              w, b, t_w, "YAGO")
    assert np.allclose(np.asarray(out_y), np.asarray(ref_y), rtol=1e-5, atol=1e-5)

    print("KERNEL_OK")
</pallas_src>

<mosaic_0001>
module attributes {stable_mosaic.version = 11 : i64} {
  func.func @t_kernel(%arg0: i32, %arg1: memref<2x128xf32, #tpu.memory_space<vmem>>, %arg2: memref<2x128xf32, #tpu.memory_space<vmem>>, %arg3: memref<1x128xf32, #tpu.memory_space<vmem>>, %arg4: memref<1x128xf32, #tpu.memory_space<vmem>>, %arg5: memref<1x128xf32, #tpu.memory_space<vmem>>, %arg6: memref<2x128xf32, #tpu.memory_space<vmem>>) attributes {dimension_semantics = [#tpu.dimension_semantics<parallel>], iteration_bounds = array<i64: 1>, scalar_prefetch = 0 : i64, scratch_operands = 0 : i64, tpu.core_type = #tpu.core_type<tc>, window_params = [{transform_indices = @transform_0, window_bounds = array<i64: 2, 128>}, {transform_indices = @transform_1, window_bounds = array<i64: 2, 128>}, {pipeline_mode = #tpu.pipeline_mode<synchronous>, transform_indices = @transform_2, window_bounds = array<i64: 1, 128>}, {pipeline_mode = #tpu.pipeline_mode<synchronous>, transform_indices = @transform_3, window_bounds = array<i64: 1, 128>}, {pipeline_mode = #tpu.pipeline_mode<synchronous>, transform_indices = @transform_4, window_bounds = array<i64: 1, 128>}, {transform_indices = @transform_5, window_bounds = array<i64: 2, 128>}]} {
    %c0 = arith.constant 0 : index
    %c0_0 = arith.constant 0 : index
    %0 = vector.load %arg5[%c0, %c0_0] : memref<1x128xf32, #tpu.memory_space<vmem>>, vector<1x128xf32>
    %c0_1 = arith.constant 0 : index
    %c0_2 = arith.constant 0 : index
    %1 = vector.load %arg3[%c0_1, %c0_2] : memref<1x128xf32, #tpu.memory_space<vmem>>, vector<1x128xf32>
    %c0_3 = arith.constant 0 : index
    %c0_4 = arith.constant 0 : index
    %2 = vector.load %arg1[%c0_3, %c0_4] : memref<2x128xf32, #tpu.memory_space<vmem>>, vector<2x128xf32>
    %3 = vector.broadcast %1 : vector<1x128xf32> to vector<2x128xf32>
    %4 = arith.mulf %3, %2 : vector<2x128xf32>
    %c0_5 = arith.constant 0 : index
    %c0_6 = arith.constant 0 : index
    %5 = vector.load %arg4[%c0_5, %c0_6] : memref<1x128xf32, #tpu.memory_space<vmem>>, vector<1x128xf32>
    %6 = vector.broadcast %5 : vector<1x128xf32> to vector<2x128xf32>
    %7 = arith.addf %4, %6 : vector<2x128xf32>
    %8 = math.cos %7 : vector<2x128xf32>
    %cst = arith.constant 1.000000e+00 : f32
    %9 = vector.broadcast %cst : f32 to vector<1x128xf32>
    %10 = arith.subf %9, %0 : vector<1x128xf32>
    %11 = vector.broadcast %10 : vector<1x128xf32> to vector<2x128xf32>
    %12 = arith.mulf %11, %8 : vector<2x128xf32>
    %c0_7 = arith.constant 0 : index
    %c0_8 = arith.constant 0 : index
    %13 = vector.load %arg2[%c0_7, %c0_8] : memref<2x128xf32, #tpu.memory_space<vmem>>, vector<2x128xf32>
    %14 = vector.broadcast %0 : vector<1x128xf32> to vector<2x128xf32>
    %15 = arith.mulf %14, %13 : vector<2x128xf32>
    %16 = arith.addf %12, %15 : vector<2x128xf32>
    %c0_9 = arith.constant 0 : index
    %c0_10 = arith.constant 0 : index
    %17 = vector.load %arg6[%c0_9, %c0_10] : memref<2x128xf32, #tpu.memory_space<vmem>>, vector<2x128xf32>
    tpu.vector_store %arg6[%c0_9, %c0_10], %16 {strides = array<i32>} : memref<2x128xf32, #tpu.memory_space<vmem>>, vector<2x128xf32>,
    return
  }
  func.func @transform_0(%arg0: i32) -> (i32, i32) {
    %c0_i32 = arith.constant 0 : i32
    %c0_i32_0 = arith.constant 0 : i32
    return %arg0, %c0_i32 : i32, i32
  }
  func.func @transform_1(%arg0: i32) -> (i32, i32) {
    %c0_i32 = arith.constant 0 : i32
    %c0_i32_0 = arith.constant 0 : i32
    return %arg0, %c0_i32 : i32, i32
  }
  func.func @transform_2(%arg0: i32) -> (i32, i32) {
    %c0_i32 = arith.constant 0 : i32
    %c0_i32_0 = arith.constant 0 : i32
    %c0_i32_1 = arith.constant 0 : i32
    return %c0_i32, %c0_i32_0 : i32, i32
  }
  func.func @transform_3(%arg0: i32) -> (i32, i32) {
    %c0_i32 = arith.constant 0 : i32
    %c0_i32_0 = arith.constant 0 : i32
    %c0_i32_1 = arith.constant 0 : i32
    return %c0_i32, %c0_i32_0 : i32, i32
  }
  func.func @transform_4(%arg0: i32) -> (i32, i32) {
    %c0_i32 = arith.constant 0 : i32
    %c0_i32_0 = arith.constant 0 : i32
    %c0_i32_1 = arith.constant 0 : i32
    return %c0_i32, %c0_i32_0 : i32, i32
  }
  func.func @transform_5(%arg0: i32) -> (i32, i32) {
    %c0_i32 = arith.constant 0 : i32
    %c0_i32_0 = arith.constant 0 : i32
    return %arg0, %c0_i32 : i32, i32
  }
}

</mosaic_0001>

<bundles_post_ra>
// kernel: tpu_custom_call.1
= control target key start
LH: loop header
LB: loop body
LE: loop exit
PB: predicated region body
PF: predicated region fallthrough
CT: control target
= control target key end

     0   :  { %10 = vsyncpa [#allocation3], 0  ;;  %s352_s0 = inlined_call_operand.hbm [shape: f32[2,128], index: 0, kind: input, shape index: {}]   ;;  %s353_s1 = inlined_call_operand.vmem [shape: f32[2,128], index: 1, kind: input, shape index: {}]   ;;  %s354_s2 = inlined_call_operand.vmem [shape: f32[1,128], index: 2, kind: input, shape index: {}]   ;;  %s355_s3 = inlined_call_operand.vmem [shape: f32[1,128], index: 3, kind: input, shape index: {}]   ;;  %s356_s4 = inlined_call_operand.vmem [shape: f32[1,128], index: 4, kind: input, shape index: {}]   ;;  %s357_s5 = inlined_call_operand.hbm [shape: f32[2,128], index: 5, kind: output, shape index: {}]  }
   0x1   :  { %11 = vsyncpa [#allocation4], 0  ;;  %s257_s18 = smov [#allocation2]   ;;  %s209_s22 = scalar_lea.hbm %s352_s0, 32 }
   0x2   :  { %s18_s19 = sshll.u32 %s257_s18, 4  ;;  %p210_p0 = scmp.ne.s32.totalorder %s352_s0, %s209_s22  ;;  %s19_s19 = int_to_ptr.vmem [resolvable:$true] %s18_s19 }
   0x3   :  { %p213_p1 = scmp.lt.u32.totalorder %s209_s22, %s352_s0 }
   0x5   :  { %p215_p2 = pnand %p213_p1, %p210_p0 }
   0x7   :  { %218 = shalt.err (!%p215_p2)
}
   0x8   :  { %s219_s27 = scalar_lea.vmem %s19_s19, 32  ;;  %p224_p4 = scmp.lt.s32.totalorder %s19_s19, %s19_s19 }
   0x9   :  { %p220_p3 = scmp.ne.s32.totalorder %s19_s19, %s219_s27  ;;  %p225_p5 = scmp.lt.s32.totalorder %s219_s27, %s219_s27 }
   0xb   :  { %p226_p6 = por %p225_p5, %p224_p4 }
   0xd   :  { %p227_p7 = pnand %p226_p6, %p220_p3 }
   0xf   :  { %230 = shalt.err (!%p227_p7)
}
  0x10   :  { %21 = dma.hbm_to_vmem [thread:$0]  %s352_s0, 32, %s19_s19, [#allocation3]  }
  0x11   :  { %253 = dma.done.wait [#allocation3], 32  }
  0x12   :  { %254 = vsyncadd [#allocation3], 4294967264  ;;  %v187_v0 = vld [vmem:[%s354_s2] ss:$0 sm:$0xff]  ;;  %v258_v16 = vmov 683565275  }
  0x13   :  { %v35_v1 = vld [vmem:[#allocation2] sm:$0x3]  ;;  %v259_v18 = vmov 2475754826   ;;  %v260_v20 = vmov 2131351028  }
  0x14   :  { %v42_v2 = vmul.f32 %v187_v0, %v35_v1  ;;  %v188_v3 = vld [vmem:[%s355_s3] ss:$0 sm:$0xff]  ;;  %v261_v22 = vmov 2102212464   ;;  %v262_v24 = vmov 920167782  }
  0x15   :  { %v263_v31 = vmov 1326507024  }
  0x16   :  { %v313_v4 = vadd.f32 %v188_v3, %v42_v2 }
  0x18   :  { %v54_v5 = vand.u32 2139095040, %v313_v4  ;;  %v51_v7 = vand.u32 2147483647, %v313_v4  ;;  %vm53_vm7 = vcmp.lt.s32.totalorder %v313_v4, 0  ;;  %vm143_vm12 = vweird.f32 %v313_v4 }
  0x1a   :  { %v55_v6 = vshrl.u32 %v54_v5, 23  ;;  %v58_v10 = vand.u32 8388607, %v51_v7  ;;  %vm52_vm8 = vcmp.le.f32.partialorder %v51_v7, 0.7853982 }
  0x1c   :  { %v189_v8 = vadd.s32 4294967169, %v55_v6  ;;  %v59_v13 = vor.u32 8388608, %v58_v10 }
  0x1e   :  { %v61_v9 = vadd.s32 1, %v189_v8  ;;  %v99_v33 = vshll.u32 %v59_v13, 8 }
  0x20   :  { %vm62_vm0 = vcmp.gt.s32.totalorder %v61_v9, 0 }
  0x21   :  { %v63_v11 = vsel %vm62_vm0, %v61_v9, 0 }
  0x22   :  { %v65_v12 = vand.u32 31, %v63_v11  ;;  %v64_v14 = vshrl.u32 %v63_v11, 5 }
  0x24   :  { %v66_v15 = vsub.s32 32, %v65_v12  ;;  %v68_v17 = vshll.u32 %v258_v16, %v65_v12  ;;  %v71_v19 = vshll.u32 %v259_v18, %v65_v12  ;;  %v74_v21 = vshll.u32 %v260_v20, %v65_v12 }
  0x25   :  { %v77_v23 = vshll.u32 %v261_v22, %v65_v12  ;;  %v80_v25 = vshll.u32 %v262_v24, %v65_v12  ;;  %vm83_vm1 = vcmp.lt.s32.totalorder %v64_v14, 1  ;;  %vm86_vm2 = vcmp.lt.s32.totalorder %v64_v14, 4 }
  0x26   :  { %v67_v26 = vshrl.u32 %v258_v16, %v66_v15  ;;  %v69_v27 = vshrl.u32 %v259_v18, %v66_v15  ;;  %v72_v28 = vshrl.u32 %v260_v20, %v66_v15  ;;  %v75_v29 = vshrl.u32 %v261_v22, %v66_v15 }
  0x27   :  { %v78_v30 = vshrl.u32 %v262_v24, %v66_v15  ;;  %v81_v32 = vshrl.u32 %v263_v31, %v66_v15  ;;  %vm84_vm3 = vcmp.lt.s32.totalorder %v64_v14, 2  ;;  %vm85_vm4 = vcmp.lt.s32.totalorder %v64_v14, 3 }
  0x28   :  { %v70_v34 = vor.u32 %v69_v27, %v68_v17  ;;  %v73_v35 = vor.u32 %v72_v28, %v71_v19  ;;  %v76_v36 = vor.u32 %v75_v29, %v74_v21  ;;  %v156_v22 = vlaneseq }
  0x29   :  { %v79_v37 = vor.u32 %v78_v30, %v77_v23  ;;  %v82_v38 = vor.u32 %v81_v32, %v80_v25 }
  0x2a   :  { %v87_v39 = vsel %vm83_vm1, %v67_v26, %v70_v34  ;;  %v88_v40 = vsel %vm86_vm2, %v76_v36, 2102212464  ;;  %v91_v41 = vsel %vm83_vm1, %v70_v34, %v73_v35  ;;  %v95_v42 = vsel %vm83_vm1, %v73_v35, %v76_v36  ;;  %v33_v26 = vld [vmem:[%s356_s4] sm:$0x1]  ;;  %s264_s4 = smov [#allocation5]  }
  0x2b   :  { %v89_v43 = vsel %vm85_vm4, %v73_v35, %v88_v40  ;;  %v92_v44 = vsel %vm86_vm2, %v79_v37, 920167782  ;;  %v96_v45 = vsel %vm86_vm2, %v82_v38, 1326507024  ;;  %v157_v25 = vshrl.u32 %v156_v22, 7  ;;  %s178_s10 = sshll.u32 %s264_s4, 4  ;;  %s179_s10 = int_to_ptr.vmem [resolvable:$true] %s178_s10 }
  0x2c   :  { %v93_v46 = vsel %vm85_vm4, %v76_v36, %v92_v44  ;;  %v97_v47 = vsel %vm85_vm4, %v79_v37, %v96_v45  ;;  %v90_v48 = vsel %vm84_vm3, %v87_v39, %v89_v43  ;;  %v154_v29 = vsub.f32 1.0, %v33_v26  ;;  %v162_v34 = vld [vmem:[%s353_s1] sm:$0x3]  ;;  %s231_s11 = scalar_lea.vmem %s179_s10, 32  ;;  %p236_p9 = scmp.lt.s32.totalorder %s179_s10, %s179_s10 }
  0x2d   :  { %v94_v49 = vsel %vm84_vm3, %v91_v41, %v93_v46  ;;  %v98_v50 = vsel %vm84_vm3, %v95_v42, %v97_v47  ;;  %v106_v55 = vmul.u32 %v99_v33, %v90_v48  ;;  %v158_v28 = vsub.s32 0, %v157_v25  ;;  %p232_p8 = scmp.ne.s32.totalorder %s179_s10, %s231_s11  ;;  %p237_p10 = scmp.lt.s32.totalorder %s231_s11, %s231_s11 }
  0x2e   :  { %v319_v51 = vmul.u32.u64.low %v99_v33, %v98_v50  ;;  %v320_v52 = vmul.u32.u64.high %v99_v33, %v98_v50, %v319_v51  ;;  %v322_v53 = vmul.u32.u64.low %v99_v33, %v94_v49  ;;  %v323_v54 = vmul.u32.u64.high %v99_v33, %v94_v49, %v322_v53 }
  0x2f   :  { %v167_v32 = vrot.slane %v33_v26, %v158_v28  ;;  %v159_v36 = vrot.slane %v154_v29, %v158_v28  ;;  %p238_p11 = por %p237_p10, %p236_p9 }
  0x30   :  { %vm108_vm5 = vc.u32 %v320_v52, %v322_v53  ;;  %v109_v56 = vadd.s32 1, %v323_v54  ;;  %v107_v3 = vadd.s32 %v322_v53, %v320_v52 }
  0x31   :  { %v169_v39 = vmul.f32 %v167_v32, %v162_v34  ;;  %p239_p12 = pnand %p238_p11, %p232_p8 }
  0x32   :  { %v110_v57 = vsel %vm108_vm5, %v109_v56, %v323_v54 }
  0x33   :  { %v111_v58 = vadd.s32 %v110_v57, %v106_v55 }
  0x35   :  { %v112_v59 = vadd.s32 536870912, %v111_v58 }
  0x37   :  { %v113_v60 = vshrl.u32 %v112_v59, 30 }
  0x39   :  { %v114_v61 = vshll.u32 %v113_v60, 30  ;;  %v137_v19 = vsub.s32 4, %v113_v60 }
  0x3b   :  { %v115_v62 = vsub.s32 %v111_v58, %v114_v61  ;;  %v138_v23 = vsel %vm53_vm7, %v137_v19, %v113_v60 }
  0x3c   :  { %v140_v24 = vsel %vm52_vm8, 0, %v138_v23 }
  0x3d   :  { %v117_v63 = vsub.s32 0, %v115_v62  ;;  %v144_v27 = vand.u32 3, %v140_v24 }
  0x3f   :  { %v190_v0 = vmin.u32 %v117_v63, %v115_v62  ;;  %vm149_vm9 = vcmp.eq.s32.totalorder %v144_v27, 2  ;;  %vm146_vm10 = vcmp.eq.s32.totalorder %v144_v27, 0  ;;  %vm145_vm11 = vcmp.lt.s32.totalorder %v144_v27, 2 }
  0x41   :  { %v119_v1 = vclz %v190_v0 }
  0x43   :  { %v191_v2 = vadd.s32 4294967294, %v119_v1 }
  0x45   :  { %vm192_vm6 = vcmp.lt.s32.totalorder %v191_v2, 0 }
  0x46   :  { %v122_v5 = vsel %vm192_vm6, 0, %v191_v2 }
  0x47   :  { %v123_v6 = vsub.s32 32, %v122_v5  ;;  %v124_v8 = vshll.u32 %v115_v62, %v122_v5  ;;  %v127_v9 = vsub.s32 4294967266, %v122_v5 }
  0x49   :  { %v125_v10 = vshrl.u32 %v107_v3, %v123_v6  ;;  %v128_v11 = vadd.s32 127, %v127_v9 }
  0x4b   :  { %v126_v12 = vor.u32 %v125_v10, %v124_v8  ;;  %v129_v13 = vshll.u32 %v128_v11, 23 }
  0x4d   :  { %v130_v14 = vor.u32 4788187, %v129_v13  ;;  %v133_v15 = vcvt.s32.f32 %v126_v12 }
  0x4f   :  { %v131_v16 = vand.u32 2147483647, %v130_v14 }
  0x51   :  { %v134_v17 = vmul.f32 %v133_v15, %v131_v16 }
  0x53   :  { %v135_v18 = vxor.u32 2147483648, %v134_v17 }
  0x55   :  { %v136_v20 = vsel %vm53_vm7, %v135_v18, %v134_v17 }
  0x56   :  { %v139_v21 = vsel %vm52_vm8, %v313_v4, %v136_v20 }
  0x57   :  { %205 = vcosq.f32 %v139_v21 }
  0x58   :  { %207 = vsinq.f32 %v139_v21 }
  0x61   :  { %v206_v30 = vpop.eup %205 }
  0x62   :  { %v208_v7 = vpop.eup %207  ;;  %v150_v31 = vxor.u32 2147483648, %v206_v30 }
  0x63   :  { %v147_v33 = vxor.u32 2147483648, %v208_v7 }
  0x64   :  { %v151_v35 = vsel %vm149_vm9, %v150_v31, %v208_v7 }
  0x65   :  { %v148_v37 = vsel %vm146_vm10, %v206_v30, %v147_v33 }
  0x66   :  { %v152_v38 = vsel %vm145_vm11, %v148_v37, %v151_v35 }
  0x67   :  { %v153_v40 = vsel %vm143_vm12, nan, %v152_v38 }
  0x68   :  { %v161_v41 = vmul.f32 %v159_v36, %v153_v40 }
  0x6a   :  { %v170_v42 = vadd.f32 %v169_v39, %v161_v41 }
  0x6c   :  { %171 = vst [vmem:[#allocation5] sm:$0x3] %v170_v42 }
  0x6d   :  { %242 = shalt.err (!%p239_p12)
}
  0x6e   :  { %s243_s13 = scalar_lea.hbm %s357_s5, 32 }
  0x6f   :  { %p244_p13 = scmp.ne.s32.totalorder %s357_s5, %s243_s13  ;;  %p247_p0 = scmp.lt.u32.totalorder %s243_s13, %s357_s5 }
  0x71   :  { %p249_p1 = pnand %p247_p0, %p244_p13 }
  0x73   :  { %252 = shalt.err (!%p249_p1)
}
  0x74   :  { %181 = dma.vmem_to_hbm [thread:$0]  %s179_s10, 32, %s357_s5, [#allocation4]  }
  0x75   :  { %255 = dma.done.wait [#allocation4], 32  }
  0x76   :  { %256 = vsyncadd [#allocation4], 4294967264 }
  0x77   :  { %185 = vsyncpa [#allocation3], 1 }
  0x78   :  { %186 = vsyncpa [#allocation4], 1 }

</bundles_post_ra>
